<compile_context>
chip_gen: v7x
topology: tpu7x:2x2x1
jax: 0.10.0
libtpu: 0.0.40
codegen_flags: <defaults>
</compile_context>

<pallas_src>
import math
from functools import partial

import jax
import jax.numpy as jnp
from jax import lax
from jax.experimental import pallas as pl
from jax.experimental.pallas import tpu as pltpu


def _round_up(x: int, m: int) -> int:
    return ((x + m - 1) // m) * m


def _sparse_act_linear_kernel(tile_active_ref,  # SMEM (num_m_tiles,) int32 (scalar prefetch)
                              x_ref,            # (tm, tk) token tile
                              w_ref,            # (tn, tk) weight tile, (out, in) layout
                              b_ref,            # (1, tn)  f32 bias tile
                              m_ref,            # (tm, 1)  f32 per-token mask column
                              o_ref,            # (tm, tn) output tile
                              acc_ref):         # VMEM (tm, tn) f32 accumulator
    i = pl.program_id(0)
    k = pl.program_id(2)
    nk = pl.num_programs(2)

    active = tile_active_ref[i] != 0
    last_k = k == nk - 1

    @pl.when(jnp.logical_and(active, k == 0))
    def _init():
        acc_ref[...] = jnp.zeros_like(acc_ref)

    # Skip the MXU work entirely for token tiles with no active tokens.
    @pl.when(active)
    def _accumulate():
        acc_ref[...] += lax.dot_general(
            x_ref[...], w_ref[...],
            dimension_numbers=(((1,), (1,)), ((), ())),   # x[., k] * w[., k]
            preferred_element_type=jnp.float32,
        )

    @pl.when(jnp.logical_and(last_k, active))
    def _finalize_active():
        y = (acc_ref[...] + b_ref[...]) * m_ref[...]      # mask zeros bias too
        o_ref[...] = y.astype(o_ref.dtype)

    @pl.when(jnp.logical_and(last_k, jnp.logical_not(active)))
    def _finalize_inactive():
        o_ref[...] = jnp.zeros_like(o_ref)


def sparse_act_linear(x, act_mask, weight, bias=None, *,
                      tm=256, tn=256, tk=256,
                      vmem_limit_bytes=32 * 1024 * 1024):
    """x: (B, S, H_in); act_mask: (B, S) int/bool; weight: (H_out, H_in);
    bias: (H_out,) or None. Returns (B, S, H_out)."""
    B, S, H_in = x.shape
    H_out, H_in_w = weight.shape
    assert H_in_w == H_in, "weight must be (out_features, in_features)"
    M = B * S

    if bias is None:
        bias = jnp.zeros((H_out,), dtype=x.dtype)

    # Clamp tile sizes to the (aligned) problem dims so small shapes don't
    # over-pad, while keeping (8, 128)-aligned, lane-dense tiles.
    tm = min(tm, _round_up(M, 8))
    tn = min(tn, _round_up(H_out, 128))
    tk = min(tk, _round_up(H_in, 128))

    Mp = _round_up(M, tm)
    Np = _round_up(H_out, tn)
    Kp = _round_up(H_in, tk)

    # Zero-pad ragged edges (zeros contribute nothing to the GEMM; padded
    # output rows/cols are sliced off below).
    x2 = x.reshape(M, H_in)
    if (Mp, Kp) != (M, H_in):
        x2 = jnp.pad(x2, ((0, Mp - M), (0, Kp - H_in)))
    w2 = weight
    if (Np, Kp) != (H_out, H_in):
        w2 = jnp.pad(w2, ((0, Np - H_out), (0, Kp - H_in)))
    b2 = bias.astype(jnp.float32)
    if Np != H_out:
        b2 = jnp.pad(b2, (0, Np - H_out))
    b2 = b2.reshape(1, Np)

    m1 = act_mask.reshape(M).astype(jnp.float32)
    if Mp != M:
        m1 = jnp.pad(m1, (0, Mp - M))
    m2 = m1.reshape(Mp, 1)

    nm, nn, nk = Mp // tm, Np // tn, Kp // tk

    # Per-M-tile "any active token" flag (SMEM scalar prefetch) -> tile skipping.
    tile_active = (m1.reshape(nm, tm).max(axis=1) > 0.0).astype(jnp.int32)

    out = pl.pallas_call(
        _sparse_act_linear_kernel,
        out_shape=jax.ShapeDtypeStruct((Mp, Np), x.dtype),
        grid_spec=pltpu.PrefetchScalarGridSpec(
            num_scalar_prefetch=1,
            grid=(nm, nn, nk),
            in_specs=[
                pl.BlockSpec((tm, tk), lambda i, j, k, ta: (i, k)),  # x tile
                pl.BlockSpec((tn, tk), lambda i, j, k, ta: (j, k)),  # weight tile
                pl.BlockSpec((1, tn), lambda i, j, k, ta: (0, j)),   # bias tile
                pl.BlockSpec((tm, 1), lambda i, j, k, ta: (i, 0)),   # mask column
            ],
            out_specs=pl.BlockSpec((tm, tn), lambda i, j, k, ta: (i, j)),
            scratch_shapes=[pltpu.VMEM((tm, tn), jnp.float32)],
        ),
        compiler_params=pltpu.CompilerParams(
            dimension_semantics=("parallel", "parallel", "arbitrary"),
            vmem_limit_bytes=vmem_limit_bytes,
        ),
    )(tile_active, x2, w2, b2, m2)

    if (Mp, Np) != (M, H_out):
        out = out[:M, :H_out]
    return out.reshape(B, S, H_out)


if __name__ == "__main__":
    key = jax.random.PRNGKey(0)
    k_x, k_m, k_w, k_b, k_x2, k_m2, k_w2, k_b2 = jax.random.split(key, 8)

    # ---- Test 1: small, module-consistent shapes ------------------------------
    B, S, H_in, H_out = 2, 8, 32, 32
    stdv = 1.0 / math.sqrt(H_in)
    weight = jax.random.uniform(k_w, (H_out, H_in), jnp.float32, -stdv, stdv)
    bias = jax.random.uniform(k_b, (H_out,), jnp.float32, -stdv, stdv)
    x = jax.random.normal(k_x, (B, S, H_in), jnp.float32)
    act_mask = (jax.random.uniform(k_m, (B, S)) > 0.5).astype(jnp.int32)

    out = sparse_act_linear(x, act_mask, weight, bias)
    out = jax.block_until_ready(out)

    ref = (x @ weight.T + bias[None, None, :]) * act_mask[..., None].astype(x.dtype)
    assert out.shape == (B, S, H_out)
    assert jnp.allclose(out, ref, atol=1e-4, rtol=1e-4), "mismatch vs reference (test 1)"

    # ---- Test 2: multi-tile M/K, ragged K, and a fully-inactive token tile ----
    B2, S2, H_in2, H_out2 = 2, 128, 384, 256
    stdv2 = 1.0 / math.sqrt(H_in2)
    weight2 = jax.random.uniform(k_w2, (H_out2, H_in2), jnp.float32, -stdv2, stdv2)
    bias2 = jax.random.uniform(k_b2, (H_out2,), jnp.float32, -stdv2, stdv2)
    x2 = jax.random.normal(k_x2, (B2, S2, H_in2), jnp.float32)
    # Batch 0 entirely inactive -> exercises the tile-skip path (tm=128 => one
    # whole M-tile is skipped); batch 1 randomly masked.
    mask_b1 = (jax.random.uniform(k_m2, (1, S2)) > 0.5)
    act_mask2 = jnp.concatenate(
        [jnp.zeros((1, S2), dtype=jnp.int32), mask_b1.astype(jnp.int32)], axis=0)

    out2 = sparse_act_linear(x2, act_mask2, weight2, bias2, tm=128)
    out2 = jax.block_until_ready(out2)

    ref2 = (x2 @ weight2.T + bias2[None, None, :]) * act_mask2[..., None].astype(x2.dtype)
    assert out2.shape == (B2, S2, H_out2)
    assert jnp.allclose(out2, ref2, atol=2e-2, rtol=2e-2), "mismatch vs reference (test 2)"

    print("KERNEL_OK")
</pallas_src>

<mosaic_0001>
module attributes {stable_mosaic.version = 11 : i64} {
  func.func @_sparse_act_linear_kernel(%arg0: i32, %arg1: i32, %arg2: i32, %arg3: memref<1xi32, #tpu.memory_space<smem>>, %arg4: memref<16x128xf32, #tpu.memory_space<vmem>>, %arg5: memref<128x128xf32, #tpu.memory_space<vmem>>, %arg6: memref<1x128xf32, #tpu.memory_space<vmem>>, %arg7: memref<16x1xf32, #tpu.memory_space<vmem>>, %arg8: memref<16x128xf32, #tpu.memory_space<vmem>>, %arg9: memref<16x128xf32, #tpu.memory_space<vmem>>) attributes {dimension_semantics = [#tpu.dimension_semantics<parallel>, #tpu.dimension_semantics<parallel>, #tpu.dimension_semantics<arbitrary>], iteration_bounds = array<i64: 1, 1, 1>, scalar_prefetch = 1 : i64, scratch_operands = 1 : i64, tpu.core_type = #tpu.core_type<tc>, window_params = [{transform_indices = @transform_0, window_bounds = array<i64: 16, 128>}, {transform_indices = @transform_1, window_bounds = array<i64: 128, 128>}, {transform_indices = @transform_2, window_bounds = array<i64: 1, 128>}, {transform_indices = @transform_3, window_bounds = array<i64: 16, 1>}, {transform_indices = @transform_4, window_bounds = array<i64: 16, 128>}]} {
    %0 = arith.index_cast %arg0 : i32 to index
    %1 = memref.load %arg3[%0] : memref<1xi32, #tpu.memory_space<smem>>
    %c0_i32 = arith.constant 0 : i32
    %2 = arith.cmpi ne, %1, %c0_i32 : i32
    %c0_i32_0 = arith.constant 0 : i32
    %3 = arith.cmpi eq, %arg2, %c0_i32_0 : i32
    %c0_i32_1 = arith.constant 0 : i32
    %4 = arith.cmpi eq, %arg2, %c0_i32_1 : i32
    %5 = arith.andi %2, %4 : i1
    %6 = arith.extui %5 : i1 to i32
    %c0_i32_2 = arith.constant 0 : i32
    %7 = arith.cmpi ne, %6, %c0_i32_2 : i32
    scf.if %7 {
      %cst = arith.constant 0.000000e+00 : f32
      %17 = vector.broadcast %cst : f32 to vector<16x128xf32>
      %c0 = arith.constant 0 : index
      %c0_6 = arith.constant 0 : index
      %18 = vector.load %arg9[%c0, %c0_6] : memref<16x128xf32, #tpu.memory_space<vmem>>, vector<16x128xf32>
      tpu.vector_store %arg9[%c0, %c0_6], %17 {strides = array<i32>} : memref<16x128xf32, #tpu.memory_space<vmem>>, vector<16x128xf32>,
    } else {
    }
    %8 = arith.extui %2 : i1 to i32
    %c0_i32_3 = arith.constant 0 : i32
    %9 = arith.cmpi ne, %8, %c0_i32_3 : i32
    scf.if %9 {
      %c0 = arith.constant 0 : index
      %c0_6 = arith.constant 0 : index
      %17 = vector.load %arg9[%c0, %c0_6] : memref<16x128xf32, #tpu.memory_space<vmem>>, vector<16x128xf32>
      %c0_7 = arith.constant 0 : index
      %c0_8 = arith.constant 0 : index
      %18 = vector.load %arg4[%c0_7, %c0_8] : memref<16x128xf32, #tpu.memory_space<vmem>>, vector<16x128xf32>
      %c0_9 = arith.constant 0 : index
      %c0_10 = arith.constant 0 : index
      %19 = vector.load %arg5[%c0_9, %c0_10] : memref<128x128xf32, #tpu.memory_space<vmem>>, vector<128x128xf32>
      %cst = arith.constant dense<0.000000e+00> : vector<16x128xf32>
      %20 = tpu.matmul %18, %19, %cst {dimension_numbers = #tpu.dot_dimension_numbers<[1], [1], [0], [0], [0, 0, 1, 0], [], []>} : vector<16x128xf32>, vector<128x128xf32>, vector<16x128xf32> -> vector<16x128xf32>
      %21 = arith.addf %17, %20 : vector<16x128xf32>
      %c0_11 = arith.constant 0 : index
      %c0_12 = arith.constant 0 : index
      %22 = vector.load %arg9[%c0_11, %c0_12] : memref<16x128xf32, #tpu.memory_space<vmem>>, vector<16x128xf32>
      tpu.vector_store %arg9[%c0_11, %c0_12], %21 {strides = array<i32>} : memref<16x128xf32, #tpu.memory_space<vmem>>, vector<16x128xf32>,
    } else {
    }
    %10 = arith.andi %3, %2 : i1
    %11 = arith.extui %10 : i1 to i32
    %c0_i32_4 = arith.constant 0 : i32
    %12 = arith.cmpi ne, %11, %c0_i32_4 : i32
    scf.if %12 {
      %c0 = arith.constant 0 : index
      %c0_6 = arith.constant 0 : index
      %17 = vector.load %arg9[%c0, %c0_6] : memref<16x128xf32, #tpu.memory_space<vmem>>, vector<16x128xf32>
      %c0_7 = arith.constant 0 : index
      %c0_8 = arith.constant 0 : index
      %18 = vector.load %arg6[%c0_7, %c0_8] : memref<1x128xf32, #tpu.memory_space<vmem>>, vector<1x128xf32>
      %19 = vector.broadcast %18 : vector<1x128xf32> to vector<16x128xf32>
      %20 = arith.addf %17, %19 : vector<16x128xf32>
      %c0_9 = arith.constant 0 : index
      %c0_10 = arith.constant 0 : index
      %21 = vector.load %arg7[%c0_9, %c0_10] : memref<16x1xf32, #tpu.memory_space<vmem>>, vector<16x1xf32>
      %22 = vector.broadcast %21 : vector<16x1xf32> to vector<16x128xf32>
      %23 = arith.mulf %20, %22 : vector<16x128xf32>
      %c0_11 = arith.constant 0 : index
      %c0_12 = arith.constant 0 : index
      %24 = vector.load %arg8[%c0_11, %c0_12] : memref<16x128xf32, #tpu.memory_space<vmem>>, vector<16x128xf32>
      tpu.vector_store %arg8[%c0_11, %c0_12], %23 {strides = array<i32>} : memref<16x128xf32, #tpu.memory_space<vmem>>, vector<16x128xf32>,
    } else {
    }
    %true = arith.constant true
    %13 = arith.xori %2, %true : i1
    %14 = arith.andi %3, %13 : i1
    %15 = arith.extui %14 : i1 to i32
    %c0_i32_5 = arith.constant 0 : i32
    %16 = arith.cmpi ne, %15, %c0_i32_5 : i32
    scf.if %16 {
      %cst = arith.constant 0.000000e+00 : f32
      %17 = vector.broadcast %cst : f32 to vector<16x128xf32>
      %c0 = arith.constant 0 : index
      %c0_6 = arith.constant 0 : index
      %18 = vector.load %arg8[%c0, %c0_6] : memref<16x128xf32, #tpu.memory_space<vmem>>, vector<16x128xf32>
      tpu.vector_store %arg8[%c0, %c0_6], %17 {strides = array<i32>} : memref<16x128xf32, #tpu.memory_space<vmem>>, vector<16x128xf32>,
    } else {
    }
    return
  }
  func.func @transform_0(%arg0: i32, %arg1: i32, %arg2: i32, %arg3: memref<1xi32, #tpu.memory_space<smem>>) -> (i32, i32) {
    %c0_i32 = arith.constant 0 : i32
    return %arg0, %arg2 : i32, i32
  }
  func.func @transform_1(%arg0: i32, %arg1: i32, %arg2: i32, %arg3: memref<1xi32, #tpu.memory_space<smem>>) -> (i32, i32) {
    %c0_i32 = arith.constant 0 : i32
    return %arg1, %arg2 : i32, i32
  }
  func.func @transform_2(%arg0: i32, %arg1: i32, %arg2: i32, %arg3: memref<1xi32, #tpu.memory_space<smem>>) -> (i32, i32) {
    %c0_i32 = arith.constant 0 : i32
    %c0_i32_0 = arith.constant 0 : i32
    return %c0_i32, %arg1 : i32, i32
  }
  func.func @transform_3(%arg0: i32, %arg1: i32, %arg2: i32, %arg3: memref<1xi32, #tpu.memory_space<smem>>) -> (i32, i32) {
    %c0_i32 = arith.constant 0 : i32
    %c0_i32_0 = arith.constant 0 : i32
    return %arg0, %c0_i32 : i32, i32
  }
  func.func @transform_4(%arg0: i32, %arg1: i32, %arg2: i32, %arg3: memref<1xi32, #tpu.memory_space<smem>>) -> (i32, i32) {
    %c0_i32 = arith.constant 0 : i32
    return %arg0, %arg1 : i32, i32
  }
}

</mosaic_0001>

<bundles_post_ra>
// kernel: tpu_custom_call.1
= control target key start
LH: loop header
LB: loop body
LE: loop exit
PB: predicated region body
PF: predicated region fallthrough
CT: control target
= control target key end

     0   :  { %11 = vsyncpa [#allocation6], 0  ;;  %s449_s0 = inlined_call_operand.<no memory space> [shape: s32[1], index: 0, kind: input, shape index: {}]   ;;  %s450_s1 = inlined_call_operand.vmem [shape: f32[16,128], index: 1, kind: input, shape index: {}]   ;;  %s451_s2 = inlined_call_operand.hbm [shape: f32[128,128], index: 2, kind: input, shape index: {}]   ;;  %s452_s3 = inlined_call_operand.vmem [shape: f32[1,128], index: 3, kind: input, shape index: {}]   ;;  %s453_s4 = inlined_call_operand.vmem [shape: f32[16,1], index: 4, kind: input, shape index: {}]   ;;  %s454_s5 = inlined_call_operand.hbm [shape: f32[16,128], index: 5, kind: output, shape index: {}]  }
   0x1   :  { %12 = vsyncpa [#allocation7], 0  ;;  %s345_s18 = smov [#allocation5]   ;;  %s297_s22 = scalar_lea.hbm %s451_s2, 2048 }
   0x2   :  { %s20_s19 = sshll.u32 %s345_s18, 4  ;;  %p298_p0 = scmp.ne.s32.totalorder %s451_s2, %s297_s22  ;;  %s21_s19 = int_to_ptr.vmem [resolvable:$true] %s20_s19 }
   0x3   :  { %p301_p1 = scmp.lt.u32.totalorder %s297_s22, %s451_s2 }
   0x5   :  { %p303_p2 = pnand %p301_p1, %p298_p0 }
   0x7   :  { %306 = shalt.err (!%p303_p2)
}
   0x8   :  { %s307_s27 = scalar_lea.vmem %s21_s19, 2048  ;;  %p312_p4 = scmp.lt.s32.totalorder %s21_s19, %s21_s19 }
   0x9   :  { %p308_p3 = scmp.ne.s32.totalorder %s21_s19, %s307_s27  ;;  %p313_p5 = scmp.lt.s32.totalorder %s307_s27, %s307_s27 }
   0xb   :  { %p314_p6 = por %p313_p5, %p312_p4 }
   0xd   :  { %p315_p7 = pnand %p314_p6, %p308_p3 }
   0xf   :  { %318 = shalt.err (!%p315_p7)
}
  0x10   :  { %s346_s28 = smov 128   ;;  %s347_s29 = smov 8  }
  0x11   :  { %26 = dma.hbm_to_vmem [thread:$0]  %s451_s2, 2048, %s21_s19, [#allocation6], %s346_s28, %s346_s28, %s347_s29  }
  0x12   :  { %341 = dma.done.wait [#allocation6], 2048  }
  0x13   :  { %342 = vsyncadd [#allocation6], 4294965248  ;;  %p35_p8 = scmp.ne.s32.totalorder %s449_s0, 0 }
  0x14   :  { %v348_v0 = vmov (%p35_p8), 0.0  }
  0x15   :  { %40 = sbr.rel (!%p35_p8) target bundleno = 28 (0x1c), region = 25  ;;  %41 = vst [vmem:[#allocation2] sm:$0xff] (%p35_p8), %v348_v0  ;;  %42 = vst [vmem:[#allocation2 + $0x8] sm:$0xff] (%p35_p8), %v348_v0 }
  0x1c PF:  { %p199_p9 = scmp.eq.s32.totalorder %s449_s0, 0 }
  0x1d   :  { %v50_v1 = vld [vmem:[#allocation5] sm:$0xff] (!%p199_p9)  ;;  %v51_v2 = vld [vmem:[#allocation5 + $0x8] sm:$0xff] (!%p199_p9)  ;;  %v52_v3 = vld [vmem:[#allocation5 + $0x10] sm:$0xff] (!%p199_p9) }
  0x1e   :  { %45 = sbr.rel (%p199_p9) target bundleno = 312 (0x138), region = 29  ;;  %v257_v4 = vpack.c.bf16 (!%p199_p9), %v51_v2, %v50_v1  ;;  %v53_v5 = vld [vmem:[#allocation5 + $0x18] sm:$0xff] (!%p199_p9)  ;;  %v48_v7 = vld [vmem:[%s450_s1] sm:$0xff] (!%p199_p9)  ;;  %v54_v8 = vld [vmem:[#allocation5 + $0x20] sm:$0xff] (!%p199_p9) }
  0x1f   :  { %v261_v6 = vpack.c.bf16 (!%p199_p9), %v53_v5, %v52_v3  ;;  %v55_v9 = vld [vmem:[#allocation5 + $0x28] sm:$0xff] (!%p199_p9)  ;;  %254 = vmatprep.mubr.f32.mxu0 (!%p199_p9), %v48_v7  ;;  %v56_v11 = vld [vmem:[#allocation5 + $0x30] sm:$0xff] (!%p199_p9)  ;;  %v57_v12 = vld [vmem:[#allocation5 + $0x38] sm:$0xff] (!%p199_p9) }
  0x20   :  { %258 = vmatprep.subr.bf16.mxu0 (!%p199_p9), %v257_v4  ;;  %v265_v10 = vpack.c.bf16 (!%p199_p9), %v55_v9, %v54_v8  ;;  %v269_v13 = vpack.c.bf16 (!%p199_p9), %v57_v12, %v56_v11  ;;  %v58_v14 = vld [vmem:[#allocation5 + $0x40] sm:$0xff] (!%p199_p9)  ;;  %v59_v15 = vld [vmem:[#allocation5 + $0x48] sm:$0xff] (!%p199_p9)  ;;  %v60_v17 = vld [vmem:[#allocation5 + $0x50] sm:$0xff] (!%p199_p9) }
  0x21   :  { %260 = vmatpush3.bf16.xpose.msra.mxu0 (!%p199_p9), %v257_v4  ;;  %v273_v16 = vpack.c.bf16 (!%p199_p9), %v59_v15, %v58_v14  ;;  %v61_v18 = vld [vmem:[#allocation5 + $0x58] sm:$0xff] (!%p199_p9)  ;;  %v62_v20 = vld [vmem:[#allocation5 + $0x60] sm:$0xff] (!%p199_p9)  ;;  %v63_v21 = vld [vmem:[#allocation5 + $0x68] sm:$0xff] (!%p199_p9) }
  0x22   :  { %262 = vmatprep.subr.bf16.mxu0 (!%p199_p9), %v261_v6  ;;  %v277_v19 = vpack.c.bf16 (!%p199_p9), %v61_v18, %v60_v17  ;;  %v281_v22 = vpack.c.bf16 (!%p199_p9), %v63_v21, %v62_v20  ;;  %v64_v23 = vld [vmem:[#allocation5 + $0x70] sm:$0xff] (!%p199_p9)  ;;  %v65_v24 = vld [vmem:[#allocation5 + $0x78] sm:$0xff] (!%p199_p9) }
  0x23   :  { %v285_v25 = vpack.c.bf16 (!%p199_p9), %v65_v24, %v64_v23  ;;  %v49_v26 = vld [vmem:[%s450_s1 + $0x8] sm:$0xff] (!%p199_p9)  ;;  %v46_v28 = vld [vmem:[#allocation2] sm:$0xff] (!%p199_p9) }
  0x24   :  { %v47_v27 = vld [vmem:[#allocation2 + $0x8] sm:$0xff] (!%p199_p9) }
  0x29   :  { %264 = vmatpush3.bf16.xpose.msra.mxu0 %v261_v6 }
  0x2a   :  { %266 = vmatprep.subr.bf16.mxu0 %v265_v10 }
  0x31   :  { %268 = vmatpush3.bf16.xpose.msra.mxu0 %v265_v10 }
  0x32   :  { %270 = vmatprep.subr.bf16.mxu0 %v269_v13 }
  0x39   :  { %272 = vmatpush3.bf16.xpose.msra.mxu0 %v269_v13 }
  0x3a   :  { %274 = vmatprep.subr.bf16.mxu0 %v273_v16 }
  0x41   :  { %276 = vmatpush3.bf16.xpose.msra.mxu0 %v273_v16 }
  0x42   :  { %278 = vmatprep.subr.bf16.mxu0 %v277_v19 }
  0x49   :  { %280 = vmatpush3.bf16.xpose.msra.mxu0 %v277_v19 }
  0x4a   :  { %282 = vmatprep.subr.bf16.mxu0 %v281_v22 }
  0x51   :  { %284 = vmatpush3.bf16.xpose.msra.mxu0 %v281_v22 }
  0x52   :  { %286 = vmatprep.subr.bf16.mxu0 %v285_v25 }
  0x59   :  { %288 = vmatpush3.bf16.xpose.msra.mxu0 %v285_v25 }
  0x60   :  { %255 = vmatmul.mubr.f32.vlgmr.msra.gmra.mrb[0].mxu0 %v49_v26 }
 0x133   :  { %v256_v29 = vpop.f32.mrb[0].mxu0 }
 0x134   :  { %v142_v30 = vadd.f32 %v256_v29, %v47_v27  ;;  %v132_v31 = vpop.f32.mrb[1].mxu0 }
 0x135   :  { %v141_v32 = vadd.f32 %v132_v31, %v46_v28 }
 0x136   :  { %144 = vst [vmem:[#allocation2 + $0x8] sm:$0xff] %v142_v30 }
 0x137   :  { %143 = vst [vmem:[#allocation2] sm:$0xff] %v141_v32 }
 0x138 PF:  { %146 = sbr.rel (!%p35_p8) target bundleno = 449 (0x1c1), region = 33  ;;  %v158_v33 = vld [vmem:[%s453_s4] sm:$0xff] (%p35_p8)  ;;  %v349_v34 = vmov (%p35_p8), 0   ;;  %v159_v35 = vld [vmem:[%s453_s4 + $0x8] sm:$0xff] (%p35_p8) }
 0x139   :  { %296 = vset.pattern.permute.xlu0 (%p35_p8), %v349_v34  ;;  %v200_v37 = vld [vmem:[%s452_s3] ss:$0 sm:$0xff] (%p35_p8) }
 0x13a   :  { %162 = vperm.xlu0 (%p35_p8), %296, %v158_v33  }
 0x13d   :  { %v148_v39 = vld [vmem:[#allocation2 + $0x8] sm:$0xff] (%p35_p8) }
 0x13e   :  { %167 = vperm.xlu0 (%p35_p8), %296, %v159_v35   ;;  %v147_v36 = vld [vmem:[#allocation2] sm:$0xff] (%p35_p8)  ;;  %v157_v42 = vadd.f32 (%p35_p8), %v200_v37, %v148_v39 }
 0x13f   :  { %v156_v38 = vadd.f32 %v200_v37, %v147_v36 }
 0x1b9   :  { %v163_v40 = vpop.permute.xlu0 %162 }
 0x1ba   :  { %v170_v41 = vmul.f32 %v163_v40, %v156_v38 }
 0x1bc   :  { %172 = vst [vmem:[#allocation8] sm:$0xff] %v170_v41 }
 0x1bd   :  { %v168_v43 = vpop.permute.xlu0 %167 }
 0x1be   :  { %v171_v44 = vmul.f32 %v168_v43, %v157_v42 }
 0x1c0   :  { %173 = vst [vmem:[#allocation8 + $0x8] sm:$0xff] %v171_v44 }
 0x1c1 PF:  { %178 = sbr.rel (!%p199_p9) target bundleno = 456 (0x1c8), region = 37  ;;  %v350_v45 = vmov (%p199_p9), 0.0  }
 0x1c2   :  { %179 = vst [vmem:[#allocation8] sm:$0xff] (%p199_p9), %v350_v45  ;;  %180 = vst [vmem:[#allocation8 + $0x8] sm:$0xff] (%p199_p9), %v350_v45 }
 0x1c8 PF:  { %s351_s3 = smov [#allocation8]  }
 0x1c9   :  { %s186_s4 = sshll.u32 %s351_s3, 4  ;;  %s187_s4 = int_to_ptr.vmem [resolvable:$true] %s186_s4 }
 0x1ca   :  { %s319_s27 = scalar_lea.vmem %s187_s4, 256  ;;  %p324_p11 = scmp.lt.s32.totalorder %s187_s4, %s187_s4 }
 0x1cb   :  { %p320_p10 = scmp.ne.s32.totalorder %s187_s4, %s319_s27  ;;  %p325_p12 = scmp.lt.s32.totalorder %s319_s27, %s319_s27 }
 0x1cd   :  { %p326_p13 = por %p325_p12, %p324_p11 }
 0x1cf   :  { %p327_p0 = pnand %p326_p13, %p320_p10 }
 0x1d1   :  { %330 = shalt.err (!%p327_p0)
}
 0x1d2   :  { %s331_s7 = scalar_lea.hbm %s454_s5, 256 }
 0x1d3   :  { %p332_p1 = scmp.ne.s32.totalorder %s454_s5, %s331_s7  ;;  %p335_p2 = scmp.lt.u32.totalorder %s331_s7, %s454_s5 }
 0x1d5   :  { %p337_p3 = pnand %p335_p2, %p332_p1 }
 0x1d7   :  { %340 = shalt.err (!%p337_p3)
}
 0x1d8   :  { %192 = dma.vmem_to_hbm [thread:$0]  %s187_s4, 256, %s454_s5, [#allocation7], %s346_s28, %s346_s28, %s347_s29  }
 0x1d9   :  { %343 = dma.done.wait [#allocation7], 256  }
 0x1da   :  { %344 = vsyncadd [#allocation7], 4294967040 }
 0x1db   :  { %196 = vsyncpa [#allocation6], 1 }
 0x1dc   :  { %197 = vsyncpa [#allocation7], 1 }

</bundles_post_ra>
